<compile_context>
chip_gen: v6e
topology: v6e:2x2x1
jax: 0.10.0
libtpu: 0.0.40
codegen_flags: <defaults>
</compile_context>

<pallas_src>
import jax
import jax.numpy as jnp
from jax.experimental import pallas as pl
from jax.experimental.pallas import tpu as pltpu
import numpy as np

_HIGH = jax.lax.Precision.HIGHEST


def _softplus(x):
    # numerically stable softplus (matches the "all > 0" contract of the map module)
    return jnp.where(x > 20.0, x, jnp.log1p(jnp.exp(jnp.minimum(x, 20.0))))


def _round_up(a, b):
    return (a + b - 1) // b * b


def _coupling_kernel(x_ref, tc_ref, w1t_ref, w2t_ref, b2_ref, z_ref):
    """One (row-tile, image) grid step, everything lane-dense (points on the lane axis).

    x_ref   : (3, tm)   rows = [masked0, masked1, z], columns = points
    tc_ref  : (H, 1)    per-image hoisted t_feat contribution: (t_feat @ W1[2:] + b1)^T
    w1t_ref : (H, 8)    W1 rows of the two masked channels, transposed, K zero-padded to 8
    w2t_ref : (16, H)   W2^T, output rows zero-padded 10 -> 16
    b2_ref  : (16, 1)
    z_ref   : (1, tm)   warped channel output plane
    """
    x = x_ref[...].astype(jnp.float32)                                    # (3, tm)
    tm = x.shape[1]

    # ---- `map` MLP layer 1 on the MXU (contraction dim zero-padded 2 -> 8) ----
    ta = jnp.concatenate(
        [jnp.tanh(x[0:2, :]), jnp.zeros((6, tm), jnp.float32)], axis=0)   # (8, tm)
    h = jnp.dot(w1t_ref[...], ta, preferred_element_type=jnp.float32) + tc_ref[...]
    h = jnp.maximum(h, 0.0)                                               # (H, tm)

    # ---- layer 2 on the MXU ----
    raw = jnp.dot(w2t_ref[...], h, preferred_element_type=jnp.float32) + b2_ref[...]
    d = _softplus(raw)                                                    # (16, tm), rows 0..9 used

    # rows of d (torch.split order): dxl2, dxl1, dxr1, dxr2, dyl2, dyl1, dyr1, dyr2, kl, kr
    kl = d[8:9, :] * 2.0
    kr = d[9:10, :] * 2.0
    xL1 = -d[1:2, :]
    xL2 = xL1 - d[0:1, :]
    xR1 = d[2:3, :]
    xR2 = xR1 + d[3:4, :]
    yL1 = -d[5:6, :]
    yL2 = yL1 - d[4:5, :]
    yR1 = d[6:7, :]
    yR2 = yR1 + d[7:8, :]
    xL3 = xL2 - 10000.0
    xR3 = xR2 + 10000.0
    yL3 = yL2 - kl * 10000.0
    yR3 = yR2 + kr * 10000.0

    qc = jnp.clip(x[2:3, :], xL3 * 0.99, xR3 * 0.99)                      # (1, tm)

    # knots stacked on sublanes; the 5 segments are consecutive row pairs
    all_x = jnp.concatenate([xL3, xL2, xL1, xR1, xR2, xR3], axis=0)       # (6, tm)
    all_y = jnp.concatenate([yL3, yL2, yL1, yR1, yR2, yR3], axis=0)
    xl, xr = all_x[:-1, :], all_x[1:, :]                                  # (5, tm)
    yl, yr = all_y[:-1, :], all_y[1:, :]

    sel = ((qc >= xl) & (qc < xr)).astype(jnp.float32)                    # one-hot over segments
    # guard: a degenerate *unselected* segment (softplus underflow) must not NaN the sum;
    # for any width > 1e-12 this is exactly the reference formula.
    width = jnp.maximum(xr - xl, 1e-12)
    zseg = (yr - yl) / width * (qc - xl) + yl
    z = jnp.sum(zseg * sel, axis=0, keepdims=True)                        # (1, tm)

    z_ref[...] = z.astype(z_ref.dtype)


def coupling_forward(x, t_feat, params, mask_np, *, tm_target=8192):
    """Forward pass of CouplingLayer.

    x:       [N, P, S, 3] local coordinates
    t_feat:  [N, T]       time features (T = t_dim * 3)
    mask_np: numpy [3] of 0/1, exactly one zero (the channel to be transformed)
    returns  [N, P, S, 3] canonical coordinates
    """
    N, P, S, C = x.shape
    assert C == 3
    masked_idx = [i for i in range(C) if float(mask_np[i]) == 1.0]
    z_idx = [i for i in range(C) if float(mask_np[i]) == 0.0][0]
    assert len(masked_idx) == 2
    perm = masked_idx + [z_idx]
    PS = P * S

    # tile size: a multiple of 128 (lane dim), large to amortize the ~0.35 us/step overhead,
    # capped at 8192 so intermediates stay comfortably inside v7x's 64 MiB VMEM.
    tm = _round_up(min(int(tm_target), _round_up(PS, 128)), 128)
    PS_pad = _round_up(PS, tm)

    # channel-major, channel order [masked0, masked1, z]; points on the lane axis.
    # Input dtype is preserved (cast to f32 inside VMEM).
    x3 = x.reshape(N, PS, C)
    x_cm = jnp.transpose(x3, (0, 2, 1))[:, jnp.array(perm), :]
    if PS_pad != PS:
        x_cm = jnp.pad(x_cm, ((0, 0), (0, 0), (0, PS_pad - PS)))

    w1 = params["w1"].astype(jnp.float32)
    b1 = params["b1"].astype(jnp.float32)
    w2 = params["w2"].astype(jnp.float32)
    b2 = params["b2"].astype(jnp.float32)
    H = w1.shape[1]
    O = w2.shape[1]                 # 10
    Op = _round_up(O, 8)            # 16

    # Hoist the per-image t_feat contribution of layer 1: tc[n] = t_feat[n] @ W1[2:] + b1
    tc = jnp.dot(t_feat.astype(jnp.float32), w1[2:, :], precision=_HIGH) + b1   # (N, H)
    tc = tc.reshape(N, H, 1)

    # Transposed / padded weights for the channel-major kernel (all matmul dims sublane-aligned).
    w1t = jnp.zeros((H, 8), jnp.float32).at[:, :2].set(w1[:2, :].T)
    w2t = jnp.zeros((Op, H), jnp.float32).at[:O, :].set(w2.T)
    b2c = jnp.zeros((Op, 1), jnp.float32).at[:O, 0].set(b2.reshape(-1))

    z_pad = pl.pallas_call(
        _coupling_kernel,
        out_shape=jax.ShapeDtypeStruct((N, 1, PS_pad), x.dtype),
        grid_spec=pltpu.PrefetchScalarGridSpec(
            num_scalar_prefetch=0,
            grid=(PS_pad // tm, N),   # large axis first: keeps v7x's two TensorCores balanced
            in_specs=[
                pl.BlockSpec((None, C, tm), lambda i, n: (n, 0, i)),   # coords (only large stream)
                pl.BlockSpec((None, H, 1), lambda i, n: (n, 0, 0)),    # per-image tc column
                pl.BlockSpec((H, 8), lambda i, n: (0, 0)),             # W1m^T (padded)
                pl.BlockSpec((Op, H), lambda i, n: (0, 0)),            # W2^T  (padded)
                pl.BlockSpec((Op, 1), lambda i, n: (0, 0)),            # b2 column (padded)
            ],
            out_specs=pl.BlockSpec((None, 1, tm), lambda i, n: (n, 0, i)),
        ),
        compiler_params=pltpu.CompilerParams(
            dimension_semantics=("parallel", "parallel")),
    )(x_cm, tc, w1t, w2t, b2c)

    z = z_pad[:, 0, :PS]                                   # (N, PS)
    out3 = x3.at[:, :, z_idx].set(z.astype(x.dtype))       # pass-through channels untouched
    return out3.reshape(N, P, S, C)


def coupling_forward_ref(x, t_feat, params, mask_np):
    """Pure-JAX reference mirroring the PyTorch semantics (full-precision matmuls)."""
    N, P, S, C = x.shape
    masked_idx = [i for i in range(C) if float(mask_np[i]) == 1.0]
    z_idx = [i for i in range(C) if float(mask_np[i]) == 0.0][0]
    M = N * P * S
    x_flat = x.reshape(M, C)
    feat_in = jnp.tanh(x_flat[:, jnp.array(masked_idx)])
    t_b = jnp.broadcast_to(t_feat[:, None, None, :],
                           (N, P, S, t_feat.shape[-1])).reshape(M, -1)
    feat = jnp.concatenate([feat_in, t_b], axis=-1)
    h = jnp.maximum(jnp.dot(feat, params["w1"], precision=_HIGH) + params["b1"], 0.0)
    d = _softplus(jnp.dot(h, params["w2"], precision=_HIGH) + params["b2"])
    dxl2, dxl1, dxr1, dxr2, dyl2, dyl1, dyr1, dyr2, kl, kr = jnp.split(d, 10, axis=-1)
    kl, kr = kl * 2.0, kr * 2.0
    xL1, xL2 = -dxl1, -dxl1 - dxl2
    yL1, yL2 = -dyl1, -dyl1 - dyl2
    xR1, xR2 = dxr1, dxr1 + dxr2
    yR1, yR2 = dyr1, dyr1 + dyr2
    xR3, xL3 = xR2 + 10000.0, xL2 - 10000.0
    yR3, yL3 = yR2 + kr * 10000.0, yL2 - kl * 10000.0
    all_x = jnp.concatenate([xL3, xL2, xL1, xR1, xR2, xR3], axis=-1)
    all_y = jnp.concatenate([yL3, yL2, yL1, yR1, yR2, yR3], axis=-1)
    qx = x_flat[:, z_idx:z_idx + 1]
    xl_a, xr_a = all_x[:, :-1], all_x[:, 1:]
    yl_a, yr_a = all_y[:, :-1], all_y[:, 1:]
    qx = jnp.clip(qx, xl_a[:, 0:1] * 0.99, xr_a[:, -1:] * 0.99)
    sel = ((qx >= xl_a) & (qx < xr_a)).astype(jnp.float32)
    xl = jnp.sum(xl_a * sel, -1, keepdims=True)
    xr = jnp.sum(xr_a * sel, -1, keepdims=True)
    yl = jnp.sum(yl_a * sel, -1, keepdims=True)
    yr = jnp.sum(yr_a * sel, -1, keepdims=True)
    z_interp = (yr - yl) / (xr - xl) * (qx - xl) + yl
    mask = jnp.asarray(mask_np, dtype=x.dtype)
    out_flat = (x_flat * mask[None, :]).at[:, z_idx].set(z_interp[:, 0])
    return out_flat.reshape(N, P, S, C)


if __name__ == "__main__":
    # small shapes consistent with the module's forward
    n_imgs, num_pts, num_samples = 2, 64, 8
    t_dim = 10
    T = t_dim * 3          # t_feat: [n_imgs, t_dim * 3]
    hidden = 32
    Fdim = 2 + T           # 2 masked coordinate channels + time features
    O = 10                 # dxdykk output width

    key = jax.random.PRNGKey(0)
    k_x, k_t, k_w1, k_b1, k_w2, k_b2 = jax.random.split(key, 6)

    x = jax.random.normal(k_x, (n_imgs, num_pts, num_samples, 3), dtype=jnp.float32)
    t_feat = jax.random.normal(k_t, (n_imgs, T), dtype=jnp.float32)

    params = {
        "w1": jax.random.normal(k_w1, (Fdim, hidden), dtype=jnp.float32) * 0.1,
        "b1": jax.random.normal(k_b1, (1, hidden), dtype=jnp.float32) * 0.1,
        "w2": jax.random.normal(k_w2, (hidden, O), dtype=jnp.float32) * 0.1,
        "b2": jax.random.normal(k_b2, (1, O), dtype=jnp.float32) * 0.1,
    }

    # Tolerance note: the +/-10000 sentinel knots make the piecewise-linear evaluation
    # intrinsically noisy at the ~1e-3 absolute level in f32, so two valid f32 evaluations can
    # differ by that much on rows whose query falls in the outer segments.
    for mask_np in (np.array([1.0, 1.0, 0.0], dtype=np.float32),    # warp channel z
                    np.array([1.0, 0.0, 1.0], dtype=np.float32)):   # warp channel y
        out = jax.block_until_ready(coupling_forward(x, t_feat, params, mask_np))
        ref = jax.block_until_ready(coupling_forward_ref(x, t_feat, params, mask_np))
        np.testing.assert_allclose(np.asarray(out), np.asarray(ref), rtol=5e-3, atol=5e-3)

    print("KERNEL_OK")
</pallas_src>

<mosaic_0001>
module attributes {stable_mosaic.version = 11 : i64} {
  func.func @_coupling_kernel(%arg0: i32, %arg1: i32, %arg2: memref<1x3x512xf32, #tpu.memory_space<vmem>>, %arg3: memref<1x32x1xf32, #tpu.memory_space<vmem>>, %arg4: memref<32x8xf32, #tpu.memory_space<vmem>>, %arg5: memref<16x32xf32, #tpu.memory_space<vmem>>, %arg6: memref<16x1xf32, #tpu.memory_space<vmem>>, %arg7: memref<1x1x512xf32, #tpu.memory_space<vmem>>) attributes {dimension_semantics = [#tpu.dimension_semantics<parallel>, #tpu.dimension_semantics<parallel>], iteration_bounds = array<i64: 1, 2>, scalar_prefetch = 0 : i64, scratch_operands = 0 : i64, tpu.core_type = #tpu.core_type<tc>, window_params = [{transform_indices = @transform_0, window_bounds = array<i64: 1, 3, 512>}, {transform_indices = @transform_1, window_bounds = array<i64: 1, 32, 1>}, {pipeline_mode = #tpu.pipeline_mode<synchronous>, transform_indices = @transform_2, window_bounds = array<i64: 32, 8>}, {pipeline_mode = #tpu.pipeline_mode<synchronous>, transform_indices = @transform_3, window_bounds = array<i64: 16, 32>}, {pipeline_mode = #tpu.pipeline_mode<synchronous>, transform_indices = @transform_4, window_bounds = array<i64: 16, 1>}, {transform_indices = @transform_5, window_bounds = array<i64: 1, 1, 512>}]} {
    %c0 = arith.constant 0 : index
    %c0_0 = arith.constant 0 : index
    %c0_1 = arith.constant 0 : index
    %0 = vector.load %arg2[%c0, %c0_0, %c0_1] : memref<1x3x512xf32, #tpu.memory_space<vmem>>, vector<1x3x512xf32>
    %1 = vector.shape_cast %0 : vector<1x3x512xf32> to vector<3x512xf32>
    %2 = vector.extract_strided_slice %1 {offsets = [0, 0], sizes = [2, 512], strides = [1, 1]} : vector<3x512xf32> to vector<2x512xf32>
    %3 = math.tanh %2 : vector<2x512xf32>
    %cst = arith.constant 0.000000e+00 : f32
    %4 = vector.broadcast %cst : f32 to vector<6x512xf32>
    %5 = tpu.concatenate %3, %4 in 0 : vector<2x512xf32>, vector<6x512xf32> -> vector<8x512xf32>
    %c0_2 = arith.constant 0 : index
    %c0_3 = arith.constant 0 : index
    %6 = vector.load %arg4[%c0_2, %c0_3] : memref<32x8xf32, #tpu.memory_space<vmem>>, vector<32x8xf32>
    %cst_4 = arith.constant dense<0.000000e+00> : vector<32x512xf32>
    %7 = tpu.matmul %6, %5, %cst_4 {dimension_numbers = #tpu.dot_dimension_numbers<[1], [0], [0], [1], [0, 0, 1, 1], [], []>} : vector<32x8xf32>, vector<8x512xf32>, vector<32x512xf32> -> vector<32x512xf32>
    %c0_5 = arith.constant 0 : index
    %c0_6 = arith.constant 0 : index
    %c0_7 = arith.constant 0 : index
    %8 = vector.load %arg3[%c0_5, %c0_6, %c0_7] : memref<1x32x1xf32, #tpu.memory_space<vmem>>, vector<1x32x1xf32>
    %9 = vector.shape_cast %8 : vector<1x32x1xf32> to vector<32x1xf32>
    %10 = vector.broadcast %9 : vector<32x1xf32> to vector<32x512xf32>
    %11 = arith.addf %7, %10 : vector<32x512xf32>
    %cst_8 = arith.constant 0.000000e+00 : f32
    %12 = vector.broadcast %cst_8 : f32 to vector<32x512xf32>
    %13 = arith.maximumf %11, %12 : vector<32x512xf32>
    %c0_9 = arith.constant 0 : index
    %c0_10 = arith.constant 0 : index
    %14 = vector.load %arg5[%c0_9, %c0_10] : memref<16x32xf32, #tpu.memory_space<vmem>>, vector<16x32xf32>
    %cst_11 = arith.constant dense<0.000000e+00> : vector<16x512xf32>
    %15 = tpu.matmul %14, %13, %cst_11 {dimension_numbers = #tpu.dot_dimension_numbers<[1], [0], [0], [1], [0, 0, 1, 1], [], []>} : vector<16x32xf32>, vector<32x512xf32>, vector<16x512xf32> -> vector<16x512xf32>
    %c0_12 = arith.constant 0 : index
    %c0_13 = arith.constant 0 : index
    %16 = vector.load %arg6[%c0_12, %c0_13] : memref<16x1xf32, #tpu.memory_space<vmem>>, vector<16x1xf32>
    %17 = vector.broadcast %16 : vector<16x1xf32> to vector<16x512xf32>
    %18 = arith.addf %15, %17 : vector<16x512xf32>
    %cst_14 = arith.constant 2.000000e+01 : f32
    %19 = vector.broadcast %cst_14 : f32 to vector<16x512xf32>
    %20 = arith.cmpf ogt, %18, %19 : vector<16x512xf32>
    %cst_15 = arith.constant 2.000000e+01 : f32
    %21 = vector.broadcast %cst_15 : f32 to vector<16x512xf32>
    %22 = arith.minimumf %18, %21 : vector<16x512xf32>
    %23 = math.exp %22 : vector<16x512xf32>
    %24 = math.log1p %23 : vector<16x512xf32>
    %25 = arith.select %20, %18, %24 : vector<16x512xi1>, vector<16x512xf32>
    %26 = vector.extract_strided_slice %25 {offsets = [8, 0], sizes = [1, 512], strides = [1, 1]} : vector<16x512xf32> to vector<1x512xf32>
    %cst_16 = arith.constant 2.000000e+00 : f32
    %27 = vector.broadcast %cst_16 : f32 to vector<1x512xf32>
    %28 = arith.mulf %26, %27 : vector<1x512xf32>
    %29 = vector.extract_strided_slice %25 {offsets = [9, 0], sizes = [1, 512], strides = [1, 1]} : vector<16x512xf32> to vector<1x512xf32>
    %cst_17 = arith.constant 2.000000e+00 : f32
    %30 = vector.broadcast %cst_17 : f32 to vector<1x512xf32>
    %31 = arith.mulf %29, %30 : vector<1x512xf32>
    %32 = vector.extract_strided_slice %25 {offsets = [1, 0], sizes = [1, 512], strides = [1, 1]} : vector<16x512xf32> to vector<1x512xf32>
    %cst_18 = arith.constant 0.000000e+00 : f32
    %33 = vector.broadcast %cst_18 : f32 to vector<1x512xf32>
    %34 = arith.subf %33, %32 : vector<1x512xf32>
    %35 = vector.extract_strided_slice %25 {offsets = [0, 0], sizes = [1, 512], strides = [1, 1]} : vector<16x512xf32> to vector<1x512xf32>
    %36 = arith.subf %34, %35 : vector<1x512xf32>
    %37 = vector.extract_strided_slice %25 {offsets = [2, 0], sizes = [1, 512], strides = [1, 1]} : vector<16x512xf32> to vector<1x512xf32>
    %38 = vector.extract_strided_slice %25 {offsets = [3, 0], sizes = [1, 512], strides = [1, 1]} : vector<16x512xf32> to vector<1x512xf32>
    %39 = arith.addf %37, %38 : vector<1x512xf32>
    %40 = vector.extract_strided_slice %25 {offsets = [5, 0], sizes = [1, 512], strides = [1, 1]} : vector<16x512xf32> to vector<1x512xf32>
    %cst_19 = arith.constant 0.000000e+00 : f32
    %41 = vector.broadcast %cst_19 : f32 to vector<1x512xf32>
    %42 = arith.subf %41, %40 : vector<1x512xf32>
    %43 = vector.extract_strided_slice %25 {offsets = [4, 0], sizes = [1, 512], strides = [1, 1]} : vector<16x512xf32> to vector<1x512xf32>
    %44 = arith.subf %42, %43 : vector<1x512xf32>
    %45 = vector.extract_strided_slice %25 {offsets = [6, 0], sizes = [1, 512], strides = [1, 1]} : vector<16x512xf32> to vector<1x512xf32>
    %46 = vector.extract_strided_slice %25 {offsets = [7, 0], sizes = [1, 512], strides = [1, 1]} : vector<16x512xf32> to vector<1x512xf32>
    %47 = arith.addf %45, %46 : vector<1x512xf32>
    %cst_20 = arith.constant 1.000000e+04 : f32
    %48 = vector.broadcast %cst_20 : f32 to vector<1x512xf32>
    %49 = arith.subf %36, %48 : vector<1x512xf32>
    %cst_21 = arith.constant 1.000000e+04 : f32
    %50 = vector.broadcast %cst_21 : f32 to vector<1x512xf32>
    %51 = arith.addf %39, %50 : vector<1x512xf32>
    %cst_22 = arith.constant 1.000000e+04 : f32
    %52 = vector.broadcast %cst_22 : f32 to vector<1x512xf32>
    %53 = arith.mulf %28, %52 : vector<1x512xf32>
    %54 = arith.subf %44, %53 : vector<1x512xf32>
    %cst_23 = arith.constant 1.000000e+04 : f32
    %55 = vector.broadcast %cst_23 : f32 to vector<1x512xf32>
    %56 = arith.mulf %31, %55 : vector<1x512xf32>
    %57 = arith.addf %47, %56 : vector<1x512xf32>
    %58 = vector.extract_strided_slice %1 {offsets = [2, 0], sizes = [1, 512], strides = [1, 1]} : vector<3x512xf32> to vector<1x512xf32>
    %cst_24 = arith.constant 9.900000e-01 : f32
    %59 = vector.broadcast %cst_24 : f32 to vector<1x512xf32>
    %60 = arith.mulf %49, %59 : vector<1x512xf32>
    %cst_25 = arith.constant 9.900000e-01 : f32
    %61 = vector.broadcast %cst_25 : f32 to vector<1x512xf32>
    %62 = arith.mulf %51, %61 : vector<1x512xf32>
    %63 = arith.maximumf %60, %58 : vector<1x512xf32>
    %64 = arith.minimumf %62, %63 : vector<1x512xf32>
    %65 = tpu.concatenate %49, %36, %34, %37, %39, %51 in 0 : vector<1x512xf32>, vector<1x512xf32>, vector<1x512xf32>, vector<1x512xf32>, vector<1x512xf32>, vector<1x512xf32> -> vector<6x512xf32>
    %66 = tpu.concatenate %54, %44, %42, %45, %47, %57 in 0 : vector<1x512xf32>, vector<1x512xf32>, vector<1x512xf32>, vector<1x512xf32>, vector<1x512xf32>, vector<1x512xf32> -> vector<6x512xf32>
    %67 = vector.extract_strided_slice %65 {offsets = [0, 0], sizes = [5, 512], strides = [1, 1]} : vector<6x512xf32> to vector<5x512xf32>
    %68 = vector.extract_strided_slice %65 {offsets = [1, 0], sizes = [5, 512], strides = [1, 1]} : vector<6x512xf32> to vector<5x512xf32>
    %69 = vector.extract_strided_slice %66 {offsets = [0, 0], sizes = [5, 512], strides = [1, 1]} : vector<6x512xf32> to vector<5x512xf32>
    %70 = vector.extract_strided_slice %66 {offsets = [1, 0], sizes = [5, 512], strides = [1, 1]} : vector<6x512xf32> to vector<5x512xf32>
    %71 = vector.broadcast %64 : vector<1x512xf32> to vector<5x512xf32>
    %72 = arith.cmpf oge, %71, %67 : vector<5x512xf32>
    %73 = vector.broadcast %64 : vector<1x512xf32> to vector<5x512xf32>
    %74 = arith.cmpf olt, %73, %68 : vector<5x512xf32>
    %75 = arith.andi %72, %74 : vector<5x512xi1>
    %76 = arith.extui %75 : vector<5x512xi1> to vector<5x512xi32>
    %77 = arith.sitofp %76 : vector<5x512xi32> to vector<5x512xf32>
    %78 = arith.subf %68, %67 : vector<5x512xf32>
    %cst_26 = arith.constant 9.99999996E-13 : f32
    %79 = vector.broadcast %cst_26 : f32 to vector<5x512xf32>
    %80 = arith.maximumf %78, %79 : vector<5x512xf32>
    %81 = arith.subf %70, %69 : vector<5x512xf32>
    %82 = arith.divf %81, %80 : vector<5x512xf32>
    %83 = vector.broadcast %64 : vector<1x512xf32> to vector<5x512xf32>
    %84 = arith.subf %83, %67 : vector<5x512xf32>
    %85 = arith.mulf %82, %84 : vector<5x512xf32>
    %86 = arith.addf %85, %69 : vector<5x512xf32>
    %87 = arith.mulf %86, %77 : vector<5x512xf32>
    %cst_27 = arith.constant dense<0.000000e+00> : vector<512xf32>
    %88 = vector.multi_reduction <add>, %87, %cst_27 [0] : vector<5x512xf32> to vector<512xf32>
    %89 = vector.shape_cast %88 : vector<512xf32> to vector<1x512xf32>
    %c0_28 = arith.constant 0 : index
    %c0_29 = arith.constant 0 : index
    %c0_30 = arith.constant 0 : index
    %90 = vector.load %arg7[%c0_28, %c0_29, %c0_30] : memref<1x1x512xf32, #tpu.memory_space<vmem>>, vector<1x1x512xf32>
    %91 = vector.shape_cast %90 : vector<1x1x512xf32> to vector<1x512xf32>
    %92 = vector.shape_cast %89 : vector<1x512xf32> to vector<1x1x512xf32>
    tpu.vector_store %arg7[%c0_28, %c0_29, %c0_30], %92 {strides = array<i32>} : memref<1x1x512xf32, #tpu.memory_space<vmem>>, vector<1x1x512xf32>,
    return
  }
  func.func @transform_0(%arg0: i32, %arg1: i32) -> (i32, i32, i32) {
    %c0_i32 = arith.constant 0 : i32
    %c0_i32_0 = arith.constant 0 : i32
    return %arg1, %c0_i32, %arg0 : i32, i32, i32
  }
  func.func @transform_1(%arg0: i32, %arg1: i32) -> (i32, i32, i32) {
    %c0_i32 = arith.constant 0 : i32
    %c0_i32_0 = arith.constant 0 : i32
    %c0_i32_1 = arith.constant 0 : i32
    return %arg1, %c0_i32, %c0_i32_0 : i32, i32, i32
  }
  func.func @transform_2(%arg0: i32, %arg1: i32) -> (i32, i32) {
    %c0_i32 = arith.constant 0 : i32
    %c0_i32_0 = arith.constant 0 : i32
    %c0_i32_1 = arith.constant 0 : i32
    return %c0_i32, %c0_i32_0 : i32, i32
  }
  func.func @transform_3(%arg0: i32, %arg1: i32) -> (i32, i32) {
    %c0_i32 = arith.constant 0 : i32
    %c0_i32_0 = arith.constant 0 : i32
    %c0_i32_1 = arith.constant 0 : i32
    return %c0_i32, %c0_i32_0 : i32, i32
  }
  func.func @transform_4(%arg0: i32, %arg1: i32) -> (i32, i32) {
    %c0_i32 = arith.constant 0 : i32
    %c0_i32_0 = arith.constant 0 : i32
    %c0_i32_1 = arith.constant 0 : i32
    return %c0_i32, %c0_i32_0 : i32, i32
  }
  func.func @transform_5(%arg0: i32, %arg1: i32) -> (i32, i32, i32) {
    %c0_i32 = arith.constant 0 : i32
    %c0_i32_0 = arith.constant 0 : i32
    return %arg1, %c0_i32, %arg0 : i32, i32, i32
  }
}

</mosaic_0001>

<bundles_post_ra>
// kernel: tpu_custom_call.1
= control target key start
LH: loop header
LB: loop body
LE: loop exit
PB: predicated region body
PF: predicated region fallthrough
CT: control target
= control target key end

     0   :  { %10 = vsyncpa [#allocation3], 0  ;;  %s2267_s0 = inlined_call_operand.vmem [shape: f32[2,3,512], index: 0, kind: input, shape index: {}]   ;;  %s2268_s1 = inlined_call_operand.vmem [shape: f32[2,32,1], index: 1, kind: input, shape index: {}]   ;;  %s2269_s2 = inlined_call_operand.vmem [shape: f32[32,8], index: 2, kind: input, shape index: {}]   ;;  %s2270_s3 = inlined_call_operand.vmem [shape: f32[16,32], index: 3, kind: input, shape index: {}]   ;;  %s2271_s4 = inlined_call_operand.vmem [shape: f32[16,1], index: 4, kind: input, shape index: {}]   ;;  %s2272_s5 = inlined_call_operand.hbm [shape: f32[2,1,512], index: 5, kind: output, shape index: {}]  }
   0x1   :  { %12 = vsyncpa [#allocation3 + $0x1], 0  ;;  %s1650_s18 = smov 0   ;;  %s1652_s19 = smov 0  }
   0x2   :  { %s1654_s20 = smov 0   ;;  %s1656_s21 = smov 0  }
   0x3   :  { %s1658_s22 = smov 0   ;;  %s1660_s23 = smov 0  }
   0x4 LB: > { %s1392_s24 = sadd.s32 4294967295, %s1614_s23   ;;  %s1393_s25 = sadd.s32 4294967294, %s1614_s23   ;;  %s1614_s23 = sphi %s1660_s23, %s18_s23   ;;  %s1610_s22 = sphi %s1658_s22, %s2316_s22   ;;  %s1606_s21 = sphi %s1656_s21, %s2315_s21   ;;  %s1602_s20 = sphi %s1654_s20, %s2314_s20   ;;  %s1598_s19 = sphi %s1652_s19, %s2313_s19   ;;  %s1594_s18 = sphi %s1650_s18, %s2312_s18  }
   0x5   : > { %s27_s26 = sadd.s32 1, %s1610_s22  ;;  %s156_s27 = sadd.s32 1, %s1602_s20 }
   0x6   : > { %p28_p0 = scmp.ge.s32.totalorder %s27_s26, 2  ;;  %p166_p1 = scmp.ne.s32.totalorder %s1602_s20, %s1598_s19 }
   0x7   : > { %p167_p2 = scmp.eq.s32.totalorder %s1392_s24, 1  ;;  %p172_p3 = scmp.ne.s32.totalorder %s1598_s19, %s1594_s18 }
   0x8   : > { %s2318_s26 = smov (%p28_p0, %s27_s26), 0  ;;  %p173_p5 = scmp.eq.s32.totalorder %s1393_s25, 1 }
   0x9   : > { %p1690_p4 = por %p167_p2, %p166_p1  ;;  %s151_s29 = ssub.s32 %s1610_s22, %s2318_s26 }
   0xa   : > { %p1396_p6 = scmp.ge.s32.totalorder %s1614_s23, 1  ;;  %p154_p7 = scmp.eq.s32.totalorder %s151_s29, 0 }
   0xb   : > { %p1697_p8 = por %p173_p5, %p172_p3  ;;  %p221_p9 = scmp.lt.s32.totalorder %s1614_s23, 3 }
   0xc   : > { %s1703_s6 = scalar_select %p154_p7, %s1602_s20, %s156_s27  }
   0xd   : > { %p222_p10 = pnand %p1396_p6, %p221_p9 }
   0xe   : > { %p259_p11 = scmp.lt.s32.totalorder (!%p222_p10), %s1606_s21, 1  ;;  %s255_s17 = sand.u32 (!%p222_p10), 1, %s1598_s19  }
   0xf   : > { %225 = sbr.rel (%p222_p10) target bundleno = 597 (0x255), region = 40  ;;  %s1397_s24 = sshll.u32 (!%p222_p10), %s255_s17, 2 }
  0x10   : > { %s1433_s25 = sshll.u32 (!%p222_p10), %s1606_s21, 6  ;;  %s257_s27 = scalar_lea.vmem (!%p222_p10), [#allocation2], %s1397_s24 }
  0x11   : > { %s1304_s29 = sshll.u32 (!%p222_p10), %s257_s27, 4  ;;  %s1288_s10 = scalar_lea.sflag (!%p222_p10), [#allocation3], %s255_s17  ;;  %s1305_s29 = int_to_ptr.vmem [resolvable:$true] %s1304_s29 }
  0x12   : > { %s1538_s11 = scalar_lea.vmem (!%p222_p10), %s1305_s29, 64 }
  0x13   : > { %p1539_p12 = scmp.ne.s32.totalorder (!%p222_p10), %s1305_s29, %s1538_s11 }
  0x14   : > { %v2274_v0 = vmov 0.0   ;;  %s260_s7 = scalar_select %p259_p11, %s1606_s21, 1  ;;  %v2276_v1 = vmov 0   ;;  %v527_v8 = vld [vmem:[%s2271_s4 + $0x8] sm:$0xff]  ;;  %v526_v9 = vld [vmem:[%s2271_s4] sm:$0xff]  ;;  %vm284_vm0 = vcmask 1041408  }
  0x15   : > { %394 = vmatprep.mubr.f32.mxu0 %v2274_v0  ;;  %483 = vmatprep.mubr.f32.mxu1 %v2274_v0  ;;  %v289_v14 = vld [vmem:[%s2269_s2] sm:$0xff]  ;;  %vm317_vm1 = vcmask 64512   ;;  %v290_v15 = vld [vmem:[%s2269_s2 + $0x8] sm:$0xff]  ;;  %v291_v16 = vld [vmem:[%s2269_s2 + $0x10] sm:$0xff]  ;;  %vm538_vm2 = vcmask 261120   ;;  %vm977_vm8 = vcmask 1040384   ;;  %p1540_p13 = pnand %p1539_p12, %p1690_p4 }
  0x16   : > { %1493 = vset.pattern.permute.xlu1 %v2276_v1  ;;  %1492 = vset.pattern.permute.xlu0 %v2276_v1  ;;  %s1431_s8 = sshll.u32 %s260_s7, 4  ;;  %s1432_s9 = sshll.u32 %s260_s7, 5  ;;  %v292_v17 = vld [vmem:[%s2269_s2 + $0x18] sm:$0xff]  ;;  %vm986_vm9 = vcmask 1042432   ;;  %vm991_vm11 = vcmask 1043456   ;;  %vm996_vm13 = vcmask 1044480  }
  0x17   : > { %s266_s12 = scalar_lea.vmem %s2267_s0, %s1431_s8  ;;  %s272_s15 = scalar_lea.vmem %s2268_s1, %s1432_s9 }
  0x18   : > { %v1717_v2 = vld [vmem:[%s266_s12] sm:$0x77]  ;;  %v1719_v3 = vld [vmem:[%s266_s12 + $0x8] sm:$0x77]  ;;  %v296_v5 = vld [vmem:[%s272_s15 + $0x18] sm:$0xff]  ;;  %s1302_s9 = scalar_lea.hbm %s2272_s5, %s1433_s25  ;;  %p1541_p0 = pneg %p1540_p13 }
  0x19   : > { %v294_v4 = vld [vmem:[%s272_s15 + $0x8] sm:$0xff]  ;;  %1494 = vtanh.f32 %v1717_v2  ;;  %v293_v6 = vld [vmem:[%s272_s15] sm:$0xff]  ;;  %314 = vperm.xlu0 %1492, %v296_v5   ;;  %v295_v7 = vld [vmem:[%s272_s15 + $0x10] sm:$0xff]  ;;  %s1619_s12 = smov [#allocation2]  }
  0x1a   : > { %304 = vperm.xlu1 %1493, %v294_v4   ;;  %1496 = vtanh.f32 %v1719_v3  ;;  %s1542_s21 = sshll.u32 %s1619_s12, 4  ;;  %s1543_s21 = int_to_ptr.vmem [resolvable:$false] %s1542_s21 }
  0x1b   : > { %s1544_s13 = scalar_lea.vmem %s1543_s21, 128  ;;  %p1545_p1 = scmp.lt.s32.totalorder %s1305_s29, %s1543_s21 }
  0x1c   : > { %p1546_p2 = scmp.lt.s32.totalorder %s1544_s13, %s1538_s11 }
  0x1d   : > { %309 = vperm.xlu0 %1492, %v295_v7  }
  0x1e   : > { %299 = vperm.xlu1 %1493, %v293_v6   ;;  %p1547_p3 = por %p1546_p2, %p1545_p1 }
  0x20   : > { %p1548_p5 = pnand %p1547_p3, %p1541_p0 }
  0x21   : > { %530 = vperm.xlu0 %1492, %v526_v9   ;;  %v524_v9 = vld [vmem:[%s2270_s3] sm:$0xff] }
  0x22   : > { %535 = vperm.xlu1 %1493, %v527_v8  }
  0x26   : > { %v1495_v10 = vpop.eup %1494 }
  0x27   : > { %v1497_v11 = vpop.eup %1496  ;;  %v280_v12 = vcombine.high %v1495_v10, %v1495_v10 }
  0x28   : > { %v281_v13 = vcombine.high %v1497_v11, %v1497_v11 }
  0x29   : > { %1402 = vmatprep.subr.msk.mxu0 %vm284_vm0, %v280_v12 }
  0x2a   : > { %1408 = vmatprep.subr.msk.mxu1 %vm284_vm0, %v281_v13  ;;  %1403 = vmatpush1.msk.msra.mxu0 %vm284_vm0, %v1495_v10 }
  0x2b   : > { %1409 = vmatpush1.msk.msra.mxu1 %vm284_vm0, %v1497_v11  ;;  %1404 = vmatmul.mubr.msk.f32.vlgmr.msra.gmra.mxu0 %vm317_vm1, %v289_v14  ;;  %v525_v11 = vld [vmem:[%s2270_s3 + $0x8] sm:$0xff] }
  0x2c   : > { %1410 = vmatmul.mubr.msk.f32.vlgmr.msra.gmra.mxu1 %vm317_vm1, %v289_v14  ;;  %400 = vmatprep.mubr.f32.mxu0 %v2274_v0 }
  0x2d   : > { %489 = vmatprep.mubr.f32.mxu1 %v2274_v0 }
  0x2f   : > { %1405 = vmatmul.mubr.msk.f32.gmra.mxu0 %vm317_vm1, %v290_v15 }
  0x30   : > { %1411 = vmatmul.mubr.msk.f32.gmra.mxu1 %vm317_vm1, %v290_v15  ;;  %406 = vmatprep.mubr.f32.mxu0 %v2274_v0 }
  0x31   : > { %495 = vmatprep.mubr.f32.mxu1 %v2274_v0 }
  0x33   : > { %1406 = vmatmul.mubr.msk.f32.gmra.mxu0 %vm317_vm1, %v291_v16 }
  0x34   : > { %1412 = vmatmul.mubr.msk.f32.gmra.mxu1 %vm317_vm1, %v291_v16  ;;  %412 = vmatprep.mubr.f32.mxu0 %v2274_v0 }
  0x35   : > { %501 = vmatprep.mubr.f32.mxu1 %v2274_v0 }
  0x37   : > { %1407 = vmatmul.mubr.msk.f32.gmra.mxu0 %vm317_vm1, %v292_v17 }
  0x38   : > { %1413 = vmatmul.mubr.msk.f32.gmra.mxu1 %vm317_vm1, %v292_v17  ;;  %609 = vmatprep.mubr.f32.mxu0 %v2274_v0 }
  0x39   : > { %686 = vmatprep.mubr.f32.mxu1 %v2274_v0 }
  0x94   : > { %v315_v25 = vpop.permute.xlu0 %314 }
  0x95   : > { %v305_v30 = vpop.permute.xlu1 %304 }
  0x98   : > { %v310_v33 = vpop.permute.xlu0 %309 }
  0x99   : > { %v300_v44 = vpop.permute.xlu1 %299 }
  0x9c   : > { %v531_v12 = vpop.permute.xlu0 %530 }
  0xeb   : > { %v396_v18 = vpop.f32.mrf.mxu0 }
  0xec   : > { %v485_v19 = vpop.f32.mrf.mxu1  ;;  %v397_v56 = vadd.f32 %v396_v18, %v300_v44 }
  0xed   : > { %v398_v20 = vpop.f32.mrf.mxu0  ;;  %v486_v60 = vadd.f32 %v485_v19, %v300_v44 }
  0xee   : > { %v487_v21 = vpop.f32.mrf.mxu1  ;;  %v399_v52 = vadd.f32 %v398_v20, %v300_v44  ;;  %v508_v7 = vmax.f32 %v397_v56, 0.0 }
  0xef   : > { %v402_v22 = vpop.f32.mrf.mxu0  ;;  %v488_v57 = vadd.f32 %v487_v21, %v300_v44  ;;  %v510_v10 = vmax.f32 %v486_v60, 0.0  ;;  %v536_v21 = vpop.permute.xlu1 %535 }
  0xf0   : > { %v491_v23 = vpop.f32.mrf.mxu1  ;;  %v403_v48 = vadd.f32 %v402_v22, %v305_v30  ;;  %v509_v5 = vmax.f32 %v399_v52, 0.0 }
  0xf1   : > { %v404_v24 = vpop.f32.mrf.mxu0  ;;  %v492_v53 = vadd.f32 %v491_v23, %v305_v30  ;;  %v511_v8 = vmax.f32 %v488_v57, 0.0 }
  0xf2   : > { %v493_v26 = vpop.f32.mrf.mxu1  ;;  %v405_v45 = vadd.f32 %v404_v24, %v305_v30  ;;  %v512_v63 = vmax.f32 %v403_v48, 0.0 }
  0xf3   : > { %v408_v27 = vpop.f32.mrf.mxu0  ;;  %v494_v49 = vadd.f32 %v493_v26, %v305_v30  ;;  %v514_v6 = vmax.f32 %v492_v53, 0.0 }
  0xf4   : > { %v497_v28 = vpop.f32.mrf.mxu1  ;;  %v409_v41 = vadd.f32 %v408_v27, %v310_v33  ;;  %v513_v61 = vmax.f32 %v405_v45, 0.0 }
  0xf5   : > { %v410_v29 = vpop.f32.mrf.mxu0  ;;  %v498_v46 = vadd.f32 %v497_v28, %v310_v33  ;;  %v515_v4 = vmax.f32 %v494_v49, 0.0 }
  0xf6   : > { %v499_v31 = vpop.f32.mrf.mxu1  ;;  %v411_v37 = vadd.f32 %v410_v29, %v310_v33  ;;  %v516_v58 = vmax.f32 %v409_v41, 0.0 }
  0xf7   : > { %v414_v32 = vpop.f32.mrf.mxu0  ;;  %v500_v42 = vadd.f32 %v499_v31, %v310_v33  ;;  %v518_v62 = vmax.f32 %v498_v46, 0.0  ;;  %v2273_v46 = vlaneseq }
  0xf8   : > { %v503_v34 = vpop.f32.mrf.mxu1  ;;  %v415_v35 = vadd.f32 %v414_v32, %v315_v25  ;;  %v517_v54 = vmax.f32 %v411_v37, 0.0 }
  0xf9   : > { %v416_v36 = vpop.f32.mrf.mxu0  ;;  %v504_v38 = vadd.f32 %v503_v34, %v315_v25  ;;  %v519_v59 = vmax.f32 %v500_v42, 0.0  ;;  %v1794_v52 = vshrl.u32 %v2273_v46, 7 }
  0xfa   : > { %v417_v39 = vadd.f32 %v416_v36, %v315_v25  ;;  %v505_v40 = vpop.f32.mrf.mxu1  ;;  %v520_v50 = vmax.f32 %v415_v35, 0.0 }
  0xfb   : > { %v506_v43 = vadd.f32 %v505_v40, %v315_v25  ;;  %v522_v55 = vmax.f32 %v504_v38, 0.0 }
  0xfc   : > { %v521_v47 = vmax.f32 %v417_v39, 0.0 }
  0xfd   : > { %v523_v51 = vmax.f32 %v506_v43, 0.0 }
  0xfe   : > { %569 = vmatprep.subr.mxu0 %v521_v47 }
  0xff   : > { %646 = vmatprep.subr.mxu1 %v523_v51  ;;  %570 = vmatpush1.msra.mxu0 %v520_v50 }
 0x100   : > { %647 = vmatpush1.msra.mxu1 %v522_v55  ;;  %571 = vmatprep.subr.mxu0 %v517_v54 }
 0x101   : > { %648 = vmatprep.subr.mxu1 %v519_v59  ;;  %572 = vmatpush1.msra.mxu0 %v516_v58  ;;  %v1800_v58 = vsub.s32 2, %v1794_v52  ;;  %v895_v59 = vsub.s32 6, %v1794_v52 }
 0x102   : > { %649 = vmatpush1.msra.mxu1 %v518_v62  ;;  %573 = vmatprep.subr.mxu0 %v513_v61 }
 0x103   : > { %650 = vmatprep.subr.mxu1 %v515_v4  ;;  %574 = vmatpush1.msra.mxu0 %v512_v63 }
 0x104   : > { %651 = vmatpush1.msra.mxu1 %v514_v6  ;;  %575 = vmatprep.subr.mxu0 %v509_v5 }
 0x105   : > { %652 = vmatprep.subr.mxu1 %v511_v8  ;;  %576 = vmatpush1.msra.mxu0 %v508_v7 }
 0x106   : > { %653 = vmatpush1.msra.mxu1 %v510_v10  ;;  %1414 = vmatmul.mubr.msk.f32.vlgmr.msra.gmra.mxu0 %vm538_vm2, %v524_v9 }
 0x107   : > { %1416 = vmatmul.mubr.msk.f32.vlgmr.msra.gmra.mxu1 %vm538_vm2, %v524_v9  ;;  %615 = vmatprep.mubr.f32.mxu0 %v2274_v0 }
 0x108   : > { %692 = vmatprep.mubr.f32.mxu1 %v2274_v0 }
 0x10a   : > { %1415 = vmatmul.mubr.msk.f32.gmra.mxu0 %vm538_vm2, %v525_v11 }
 0x10b   : > { %1417 = vmatmul.mubr.msk.f32.gmra.mxu1 %vm538_vm2, %v525_v11 }
 0x1c6   : > { %v611_v13 = vpop.f32.mrf.mxu0 }
 0x1c7   : > { %v1769_v14 = vadd.f32 %v611_v13, %v531_v12  ;;  %v688_v15 = vpop.f32.mrf.mxu1 }
 0x1c8   : > { %v1771_v16 = vadd.f32 %v688_v15, %v531_v12  ;;  %v613_v17 = vpop.f32.mrf.mxu0  ;;  %v1819_v15 = vrot.slane %v1717_v2, %v895_v59 }
 0x1c9   : > { %v707_v18 = vmin.f32 %v1769_v14, 20.0  ;;  %v1774_v19 = vadd.f32 %v613_v17, %v531_v12  ;;  %v690_v20 = vpop.f32.mrf.mxu1  ;;  %v1822_v17 = vrot.slane %v1719_v3, %v895_v59  ;;  %vm699_vm3 = vcmp.gt.f32.partialorder %v1769_v14, 20.0 }
 0x1ca   : > { %v709_v22 = vmin.f32 %v1771_v16, 20.0  ;;  %v1777_v23 = vadd.f32 %v690_v20, %v531_v12  ;;  %v617_v24 = vpop.f32.mrf.mxu0  ;;  %vm701_vm5 = vcmp.gt.f32.partialorder %v1771_v16, 20.0 }
 0x1cb   : > { %v715_v25 = vmul.f32 1.442695, %v707_v18  ;;  %v708_v26 = vmin.f32 %v1774_v19, 20.0  ;;  %v1780_v27 = vadd.f32 %v617_v24, %v536_v21  ;;  %v694_v28 = vpop.f32.mrf.mxu1  ;;  %vm700_vm10 = vcmp.gt.f32.partialorder %v1774_v19, 20.0 }
 0x1cc   : > { %v719_v29 = vmul.f32 1.442695, %v709_v22  ;;  %v710_v30 = vmin.f32 %v1777_v23, 20.0  ;;  %v1783_v31 = vadd.f32 %v694_v28, %v536_v21  ;;  %v619_v32 = vpop.f32.mrf.mxu0  ;;  %vm702_vm14 = vcmp.gt.f32.partialorder %v1777_v23, 20.0 }
 0x1cd   : > { %1498 = vpow2.f32 %v715_v25  ;;  %v717_v33 = vmul.f32 1.442695, %v708_v26  ;;  %v711_v34 = vmin.f32 %v1780_v27, 20.0  ;;  %v696_v35 = vpop.f32.mrf.mxu1  ;;  %v1787_v38 = vadd.f32 %v619_v32, %v536_v21 }
 0x1ce   : > { %1500 = vpow2.f32 %v719_v29  ;;  %v721_v36 = vmul.f32 1.442695, %v710_v30  ;;  %v713_v37 = vmin.f32 %v1783_v31, 20.0  ;;  %v1789_v39 = vadd.f32 %v696_v35, %v536_v21 }
 0x1cf   : > { %1502 = vpow2.f32 %v717_v33  ;;  %v723_v40 = vmul.f32 1.442695, %v711_v34  ;;  %v712_v41 = vmin.f32 %v1787_v38, 20.0  ;;  %vm703_vm1 = vcmp.gt.f32.partialorder %v1780_v27, 20.0 }
 0x1d0   : > { %1504 = vpow2.f32 %v721_v36  ;;  %v727_v42 = vmul.f32 1.442695, %v713_v37  ;;  %v714_v43 = vmin.f32 %v1789_v39, 20.0 }
 0x1d1   : > { %v725_v44 = vmul.f32 1.442695, %v712_v41  ;;  %1506 = vpow2.f32 %v723_v40 }
 0x1d2   : > { %v729_v45 = vmul.f32 1.442695, %v714_v43  ;;  %1508 = vpow2.f32 %v727_v42 }
 0x1d3   : > { %1510 = vpow2.f32 %v725_v44 }
 0x1d4   : > { %1512 = vpow2.f32 %v729_v45 }
 0x1da   : > { %v1499_v47 = vpop.eup %1498 }
 0x1db   : > { %v1501_v48 = vpop.eup %1500  ;;  %v731_v49 = vadd.f32 1.0, %v1499_v47  ;;  %v734_v56 = vmul.f32 -0.5, %v1499_v47  ;;  %v737_v63 = vand.u32 2147483647, %v1499_v47 }
 0x1dc   : > { %v1503_v50 = vpop.eup %1502  ;;  %v749_v51 = vadd.f32 1.0, %v1501_v48  ;;  %v752_v57 = vmul.f32 -0.5, %v1501_v48  ;;  %v755_v4 = vand.u32 2147483647, %v1501_v48 }
 0x1dd   : > { %v1796_v53 = vpop.eup %1504  ;;  %1514 = vlog2.f32 %v731_v49  ;;  %v740_v54 = vadd.f32 1.0, %v1503_v50  ;;  %v743_v61 = vmul.f32 -0.5, %v1503_v50  ;;  %v735_v7 = vadd.f32 1.0, %v734_v56 }
 0x1de   : > { %1516 = vlog2.f32 %v749_v51  ;;  %v758_v55 = vadd.f32 1.0, %v1796_v53  ;;  %v1803_v60 = vpop.eup %1506  ;;  %v761_v5 = vmul.f32 -0.5, %v1796_v53  ;;  %v753_v8 = vadd.f32 1.0, %v752_v57 }
 0x1df   : > { %1518 = vlog2.f32 %v740_v54  ;;  %v1805_v62 = vpop.eup %1508  ;;  %v767_v12 = vadd.f32 1.0, %v1803_v60  ;;  %v770_v13 = vmul.f32 -0.5, %v1803_v60  ;;  %v744_v18 = vadd.f32 1.0, %v743_v61 }
 0x1e0   : > { %1520 = vlog2.f32 %v758_v55  ;;  %v1808_v6 = vpop.eup %1510  ;;  %v746_v20 = vand.u32 2147483647, %v1503_v50  ;;  %v788_v21 = vmul.f32 -0.5, %v1805_v62  ;;  %vm1826_vm4 = vcmp.lt.f32.partialorder %v737_v63, 0.0004427343 }
 0x1e1   : > { %v1814_v11 = vpop.eup %1512  ;;  %vm1831_vm6 = vcmp.lt.f32.partialorder %v755_v4, 0.0004427343  ;;  %v762_v25 = vadd.f32 1.0, %v761_v5  ;;  %v785_v26 = vadd.f32 1.0, %v1805_v62  ;;  %v736_v28 = vmul.f32 %v1499_v47, %v735_v7 }
 0x1e2   : > { %v754_v29 = vmul.f32 %v1501_v48, %v753_v8  ;;  %v779_v30 = vmul.f32 -0.5, %v1808_v6  ;;  %v797_v32 = vmul.f32 -0.5, %v1814_v11  ;;  %v764_v33 = vand.u32 2147483647, %v1796_v53 }
 0x1e3   : > { %1522 = vlog2.f32 %v767_v12  ;;  %v771_v34 = vadd.f32 1.0, %v770_v13  ;;  %v776_v35 = vadd.f32 1.0, %v1808_v6  ;;  %v1840_v37 = vmul.f32 %v1503_v50, %v744_v18 }
 0x1e4   : > { %vm1842_vm7 = vcmp.lt.f32.partialorder %v746_v20, 0.0004427343  ;;  %v773_v41 = vand.u32 2147483647, %v1803_v60  ;;  %v789_v42 = vadd.f32 1.0, %v788_v21  ;;  %v1848_v45 = vmul.f32 %v1796_v53, %v762_v25 }
 0x1e5   : > { %1524 = vlog2.f32 %v785_v26  ;;  %v791_v47 = vand.u32 2147483647, %v1805_v62  ;;  %v780_v50 = vadd.f32 1.0, %v779_v30  ;;  %v794_v51 = vadd.f32 1.0, %v1814_v11 }
 0x1e6   : > { %v798_v54 = vadd.f32 1.0, %v797_v32  ;;  %v1855_v57 = vmul.f32 %v1803_v60, %v771_v34  ;;  %1526 = vlog2.f32 %v776_v35  ;;  %v1866_v61 = vmul.f32 %v1805_v62, %v789_v42 }
 0x1e7   : > { %v782_v63 = vand.u32 2147483647, %v1808_v6  ;;  %vm1874_vm12 = vcmp.lt.f32.partialorder %v764_v33, 0.0004427343  ;;  %v800_v12 = vand.u32 2147483647, %v1814_v11  ;;  %v1885_v18 = vmul.f32 %v1808_v6, %v780_v50 }
 0x1e8   : > { %1528 = vlog2.f32 %v794_v51  ;;  %v1888_v20 = vmul.f32 %v1814_v11, %v798_v54  ;;  %vm1937_vm15 = vcmp.lt.f32.partialorder %v773_v41, 0.0004427343  ;;  %vm2005_vm2 = vcmp.lt.f32.partialorder %v791_v47, 0.0004427343 }
 0x1ea   : > { %v1515_v36 = vpop.eup %1514 }
 0x1eb   : > { %v1517_v43 = vpop.eup %1516  ;;  %v733_v44 = vmul.f32 0.6931472, %v1515_v36 }
 0x1ec   : > { %v1519_v48 = vpop.eup %1518  ;;  %v751_v49 = vmul.f32 0.6931472, %v1517_v43 }
 0x1ed   : > { %v739_v55 = vsel %vm1826_vm4, %v736_v28, %v733_v44  ;;  %v742_v56 = vmul.f32 0.6931472, %v1519_v48  ;;  %v1521_v4 = vpop.eup %1520  ;;  %vm2023_vm4 = vcmp.lt.f32.partialorder %v782_v63, 0.0004427343 }
 0x1ee   : > { %v1860_v53 = vsel %vm699_vm3, %v1769_v14, %v739_v55  ;;  %v757_v59 = vsel %vm1831_vm6, %v754_v29, %v751_v49  ;;  %v760_v29 = vmul.f32 0.6931472, %v1521_v4  ;;  %vm705_vm3 = vcmp.gt.f32.partialorder %v1783_v31, 20.0 }
 0x1ef   : > { %v1870_v5 = vsub.f32 0.0, %v1860_v53  ;;  %v823_v7 = vrot.slane %v1860_v53, 7  ;;  %v835_v14 = vrot.slane %v1860_v53, 1  ;;  %v1882_v13 = vsel %vm701_vm5, %v1771_v16, %v757_v59 }
 0x1f0   : > { %v748_v16 = vsel %vm1842_vm7, %v1840_v37, %v742_v56  ;;  %v1901_v25 = vsub.f32 0.0, %v1882_v13  ;;  %v825_v26 = vrot.slane %v1882_v13, 7  ;;  %v837_v28 = vrot.slane %v1882_v13, 1  ;;  %v1523_v49 = vpop.eup %1522 }
 0x1f1   : > { %v1891_v21 = vsub.f32 %v1870_v5, %v823_v7  ;;  %v1894_v22 = vadd.f32 %v835_v14, %v1860_v53  ;;  %v945_v33 = vrot.slane %v1870_v5, 7  ;;  %v1025_v34 = vrot.slane %v1870_v5, 3 }
 0x1f2   : > { %v1911_v36 = vsub.f32 %v1901_v25, %v825_v26  ;;  %v1914_v37 = vadd.f32 %v837_v28, %v1882_v13  ;;  %v947_v44 = vrot.slane %v1901_v25, 7  ;;  %v1933_v14 = vsel %vm700_vm10, %v1774_v19, %v748_v16 }
 0x1f3   : > { %v1418_v30 = vadd.f32 -10000.0, %v1891_v21  ;;  %v851_v32 = vadd.f32 10000.0, %v1894_v22  ;;  %v957_v35 = vrot.slane %v1894_v22, 6  ;;  %v766_v0 = vsel %vm1874_vm12, %v1848_v45, %v760_v29 }
 0x1f4   : > { %v1420_v55 = vadd.f32 -10000.0, %v1911_v36  ;;  %v853_v59 = vadd.f32 10000.0, %v1914_v37  ;;  %v959_v4 = vrot.slane %v1914_v37, 6  ;;  %v1950_v16 = vsub.f32 0.0, %v1933_v14 }
 0x1f5   : > { %v933_v42 = vrot.slane %v1418_v30, 1  ;;  %v1921_v50 = vmul.f32 0.99, %v1418_v30  ;;  %v1923_v51 = vmul.f32 0.99, %v851_v32  ;;  %v969_v54 = vrot.slane %v851_v32, 5  ;;  %v1941_v30 = vpop.eup %1524 }
 0x1f6   : > { %v824_v60 = vrot.slane %v1933_v14, 7  ;;  %v769_v41 = vmul.f32 0.6931472, %v1523_v49  ;;  %v1953_v1 = vpop.eup %1526  ;;  %v836_v8 = vrot.slane %v1933_v14, 1  ;;  %vm2029_vm5 = vcmp.lt.f32.partialorder %v800_v12, 0.0004427343 }
 0x1f7   : > { %v978_v56 = vsel %vm977_vm8, %v933_v42, %v1891_v21  ;;  %v935_v42 = vrot.slane %v1420_v55, 1  ;;  %vm704_vm6 = vcmp.gt.f32.partialorder %v1787_v38, 20.0  ;;  %vm706_vm7 = vcmp.gt.f32.partialorder %v1789_v39, 20.0 }
 0x1f8   : > { %v982_v32 = vsel %vm284_vm0, %v978_v56, %v945_v33  ;;  %v1956_v33 = vmul.f32 0.99, %v1420_v55  ;;  %v1968_v49 = vsub.f32 %v1950_v16, %v824_v60  ;;  %v971_v55 = vrot.slane %v853_v59, 5 }
 0x1f9   : > { %v987_v19 = vsel %vm986_vm9, %v982_v32, %v823_v7  ;;  %v980_v56 = vsel %vm977_vm8, %v935_v42, %v1911_v36  ;;  %v1964_v7 = vmul.f32 0.99, %v853_v59  ;;  %v1974_v42 = vadd.f32 %v836_v8, %v1933_v14 }
 0x1fa   : > { %v992_v10 = vsel %vm991_vm11, %v987_v19, %v957_v35  ;;  %v984_v29 = vsel %vm284_vm0, %v980_v56, %v947_v44  ;;  %v1529_v19 = vpop.eup %1528  ;;  %v1984_v56 = vsel %vm702_vm14, %v1777_v23, %v766_v0 }
 0x1fb   : > { %v1962_v45 = vsel %vm996_vm13, %v992_v10, %v969_v54  ;;  %v989_v32 = vsel %vm986_vm9, %v984_v29, %v825_v26  ;;  %v1978_v54 = vadd.f32 -10000.0, %v1968_v49  ;;  %v852_v8 = vadd.f32 10000.0, %v1974_v42 }
 0x1fc   : > { %v1133_v35 = vrot.slane %v1962_v45, 7  ;;  %v994_v10 = vsel %vm991_vm11, %v989_v32, %v959_v4  ;;  %v946_v29 = vrot.slane %v1950_v16, 7  ;;  %v1996_v46 = vsub.f32 0.0, %v1984_v56 }
 0x1fd   : > { %v1988_v26 = vsel %vm996_vm13, %v994_v10, %v971_v55  ;;  %v934_v32 = vrot.slane %v1978_v54, 1  ;;  %v958_v23 = vrot.slane %v1974_v42, 6  ;;  %v775_v55 = vsel %vm1937_vm15, %v1855_v57, %v769_v41 }
 0x1fe   : > { %v1141_v59 = vsub.f32 %v1962_v45, %v1133_v35  ;;  %v1135_v4 = vrot.slane %v1988_v26, 7  ;;  %v826_v35 = vrot.slane %v1984_v56, 7  ;;  %v838_v48 = vrot.slane %v1984_v56, 1 }
 0x1ff   : > { %v979_v40 = vsel %vm977_vm8, %v934_v32, %v1968_v49  ;;  %v2015_v9 = vmul.f32 0.99, %v852_v8  ;;  %v970_v57 = vrot.slane %v852_v8, 5  ;;  %v807_v11 = vsel %vm703_vm1, %v1780_v27, %v775_v55 }
 0x200   : > { %v1145_v0 = vmax.f32 %v1141_v59, 1e-12  ;;  %v1143_v44 = vsub.f32 %v1988_v26, %v1135_v4  ;;  %v983_v62 = vsel %vm284_vm0, %v979_v40, %v946_v29  ;;  %v2019_v47 = vsub.f32 %v1996_v46, %v826_v35 }
 0x201   : > { %v988_v8 = vsel %vm986_vm9, %v983_v62, %v824_v60  ;;  %v2035_v40 = vadd.f32 %v838_v48, %v1984_v56  ;;  %v948_v29 = vrot.slane %v1996_v46, 7  ;;  %v1017_v27 = vrot.slane %v1891_v21, 4 }
 0x202   : > { %v1147_v4 = vmax.f32 %v1143_v44, 1e-12  ;;  %1530 = vrcp.f32 %v1145_v0  ;;  %v993_v6 = vsel %vm991_vm11, %v988_v8, %v958_v23  ;;  %v2040_v63 = vadd.f32 -10000.0, %v2019_v47 }
 0x203   : > { %v2048_v12 = vsel %vm996_vm13, %v993_v6, %v970_v57  ;;  %v2051_v48 = vadd.f32 10000.0, %v2035_v40  ;;  %v811_v23 = vmul.f32 2.0, %v807_v11  ;;  %v960_v55 = vrot.slane %v2035_v40, 6 }
 0x204   : > { %v1134_v32 = vrot.slane %v2048_v12, 7  ;;  %v936_v0 = vrot.slane %v2040_v63, 1  ;;  %1532 = vrcp.f32 %v1147_v4  ;;  %v787_v62 = vmul.f32 0.6931472, %v1941_v30 }
 0x205   : > { %v855_v59 = vmul.f32 10000.0, %v811_v23  ;;  %v778_v44 = vmul.f32 0.6931472, %v1953_v1  ;;  %v972_v60 = vrot.slane %v2051_v48, 5  ;;  %v796_v43 = vmul.f32 0.6931472, %v1529_v19 }
 0x206   : > { %v1142_v8 = vsub.f32 %v2048_v12, %v1134_v32  ;;  %v981_v6 = vsel %vm977_vm8, %v936_v0, %v2019_v47  ;;  %v793_v4 = vsel %vm2005_vm2, %v1866_v61, %v787_v62  ;;  %v1018_v41 = vrot.slane %v1968_v49, 4 }
 0x207   : > { %v985_v11 = vsel %vm284_vm0, %v981_v6, %v948_v29  ;;  %v863_v24 = vrot.slane %v855_v59, 3  ;;  %v809_v32 = vsel %vm705_vm3, %v1783_v31, %v793_v4  ;;  %v784_v29 = vsel %vm2023_vm4, %v1885_v18, %v778_v44 }
 0x208   : > { %v1146_v57 = vmax.f32 %v1142_v8, 1e-12  ;;  %v990_v30 = vsel %vm986_vm9, %v985_v11, %v826_v35  ;;  %v813_v1 = vmul.f32 2.0, %v809_v32  ;;  %v802_v61 = vsel %vm2029_vm5, %v1888_v20, %v796_v43 }
 0x209   : > { %v995_v0 = vsel %vm991_vm11, %v990_v30, %v960_v55  ;;  %v871_v35 = vsub.f32 %v1891_v21, %v863_v24  ;;  %v875_v10 = vadd.f32 %v863_v24, %v1894_v22  ;;  %v1019_v31 = vrot.slane %v1911_v36, 4 }
 0x20a   : > { %v2082_v19 = vsel %vm996_vm13, %v995_v0, %v972_v60  ;;  %v857_v23 = vmul.f32 10000.0, %v813_v1  ;;  %v808_v18 = vsel %vm704_vm6, %v1787_v38, %v784_v29  ;;  %v810_v20 = vsel %vm706_vm7, %v1789_v39, %v802_v61 }
 0x20b   : > { %v1136_v59 = vrot.slane %v2082_v19, 7  ;;  %v1005_v43 = vrot.slane %v871_v35, 5  ;;  %v812_v28 = vmul.f32 2.0, %v808_v18  ;;  %v814_v21 = vmul.f32 2.0, %v810_v20 }
 0x20c   : > { %1534 = vrcp.f32 %v1146_v57  ;;  %v1053_v60 = vrot.slane %v875_v10, 1  ;;  %v865_v44 = vrot.slane %v857_v23, 3  ;;  %v1020_v38 = vrot.slane %v2019_v47, 4 }
 0x20d   : > { %v1144_v24 = vsub.f32 %v2082_v19, %v1136_v59  ;;  %v1061_v55 = vsel %vm977_vm8, %v1005_v43, %v1017_v27  ;;  %v856_v62 = vmul.f32 10000.0, %v812_v28  ;;  %v858_v8 = vmul.f32 10000.0, %v814_v21 }
 0x20e   : > { %v1065_v39 = vsel %vm284_vm0, %v1061_v55, %v1025_v34  ;;  %v873_v4 = vsub.f32 %v1911_v36, %v865_v44  ;;  %v877_v57 = vadd.f32 %v865_v44, %v1914_v37  ;;  %v2296_v30 = vrot.slane %v1860_v53, 3 }
 0x20f   : > { %v2098_v6 = vpop.eup %1530  ;;  %v1148_v11 = vmax.f32 %v1144_v24, 1e-12  ;;  %v864_v27 = vrot.slane %v856_v62, 3  ;;  %v866_v0 = vrot.slane %v858_v8, 3  ;;  %v880_v1 = vmul.f32 0.99, %v1978_v54 }
 0x210   : > { %v1069_v32 = vsel %vm986_vm9, %v1065_v39, %v2296_v30  ;;  %v2297_v29 = vrot.slane %v1894_v22, 2  ;;  %v1007_v5 = vrot.slane %v873_v4, 5  ;;  %v882_v34 = vmul.f32 0.99, %v2040_v63 }
 0x211   : > { %1536 = vrcp.f32 %v1148_v11  ;;  %v1533_v35 = vpop.eup %1532  ;;  %v872_v53 = vsub.f32 %v1968_v49, %v864_v27  ;;  %v876_v10 = vadd.f32 %v864_v27, %v1974_v42  ;;  %v874_v59 = vsub.f32 %v2019_v47, %v866_v0 }
 0x212   : > { %v1073_v61 = vsel %vm991_vm11, %v1069_v32, %v2297_v29  ;;  %v1055_v23 = vrot.slane %v877_v57, 1  ;;  %v1063_v54 = vsel %vm977_vm8, %v1007_v5, %v1019_v31  ;;  %v878_v22 = vadd.f32 %v866_v0, %v2035_v40 }
 0x213   : > { %v2114_v36 = vsel %vm996_vm13, %v1073_v61, %v1053_v60  ;;  %v2298_v18 = vrot.slane %v1717_v2, %v1800_v58  ;;  %v2299_v43 = vrot.slane %v1901_v25, 3  ;;  %v1006_v28 = vrot.slane %v872_v53, 5 }
 0x214   : > { %v1153_v20 = vrot.slane %v2114_v36, 7  ;;  %v1008_v21 = vrot.slane %v874_v59, 5  ;;  %v2300_v47 = vrot.slane %v1882_v13, 3  ;;  %v1054_v31 = vrot.slane %v876_v10, 1 }
 0x215   : > { %v909_v63 = vmax.f32 %v1921_v50, %v2298_v18  ;;  %v1067_v49 = vsel %vm284_vm0, %v1063_v54, %v2299_v43  ;;  %v910_v60 = vmax.f32 %v880_v1, %v1819_v15  ;;  %v2301_v2 = vrot.slane %v1719_v3, %v1800_v58 }
 0x216   : > { %v1071_v24 = vsel %vm986_vm9, %v1067_v49, %v2300_v47  ;;  %v2302_v44 = vrot.slane %v1914_v37, 2  ;;  %v1062_v55 = vsel %vm977_vm8, %v1006_v28, %v1018_v41  ;;  %v1064_v62 = vsel %vm977_vm8, %v1008_v21, %v1020_v38 }
 0x217   : > { %v911_v50 = vmax.f32 %v1956_v33, %v2301_v2  ;;  %v912_v13 = vmax.f32 %v882_v34, %v1822_v17  ;;  %v2303_v15 = vrot.slane %v1950_v16, 3  ;;  %v1056_v3 = vrot.slane %v878_v22, 1 }
 0x218   : > { %v1075_v25 = vsel %vm991_vm11, %v1071_v24, %v2302_v44  ;;  %v2304_v33 = vrot.slane %v1996_v46, 3  ;;  %v2305_v41 = vrot.slane %v1933_v14, 3  ;;  %v2306_v17 = vrot.slane %v1984_v56, 3 }
 0x219   : > { %v2144_v8 = vsel %vm996_vm13, %v1075_v25, %v1055_v23  ;;  %v1066_v11 = vsel %vm284_vm0, %v1062_v55, %v2303_v15  ;;  %v917_v57 = vrot.slane %v909_v63, 7  ;;  %v2307_v16 = vrot.slane %v1974_v42, 2  ;;  %v1535_v1 = vpop.eup %1534 }
 0x21a   : > { %v1068_v37 = vsel %vm284_vm0, %v1064_v62, %v2304_v33  ;;  %v1155_v39 = vrot.slane %v2144_v8, 7  ;;  %v1070_v38 = vsel %vm986_vm9, %v1066_v11, %v2305_v41  ;;  %v2308_v32 = vrot.slane %v2035_v40, 2 }
 0x21b   : > { %v1072_v4 = vsel %vm986_vm9, %v1068_v37, %v2306_v17  ;;  %v1074_v30 = vsel %vm991_vm11, %v1070_v38, %v2307_v16  ;;  %v918_v27 = vrot.slane %v910_v60, 7  ;;  %v919_v0 = vrot.slane %v911_v50, 7 }
 0x21c   : > { %v1076_v46 = vsel %vm991_vm11, %v1072_v4, %v2308_v32  ;;  %v886_v14 = vmul.f32 0.99, %v2051_v48  ;;  %v2167_v29 = vsel %vm996_vm13, %v1074_v30, %v1054_v31  ;;  %v920_v61 = vrot.slane %v912_v13, 7 }
 0x21d   : > { %v2170_v56 = vsel %vm996_vm13, %v1076_v46, %v1056_v3  ;;  %v1154_v42 = vrot.slane %v2167_v29, 7  ;;  %v925_v40 = vmin.f32 %v1923_v51, %v917_v57  ;;  %v926_v34 = vmin.f32 %v2015_v9, %v918_v27 }
 0x21e   : > { %v1156_v5 = vrot.slane %v2170_v56, 7  ;;  %v1161_v53 = vsub.f32 %v2114_v36, %v1153_v20  ;;  %v1163_v48 = vsub.f32 %v2144_v8, %v1155_v39  ;;  %v927_v10 = vmin.f32 %v1964_v7, %v919_v0  ;;  %v1537_v22 = vpop.eup %1536 }
 0x21f   : > { %v928_v59 = vmin.f32 %v886_v14, %v920_v61  ;;  %v1162_v23 = vsub.f32 %v2167_v29, %v1154_v42  ;;  %v1084_v51 = vrot.slane %v925_v40, %v1800_v58  ;;  %v1088_v9 = vrot.slane %v926_v34, %v1800_v58 }
 0x220   : > { %v1164_v54 = vsub.f32 %v2170_v56, %v1156_v5  ;;  %v1092_v18 = vrot.slane %v927_v10, %v1800_v58  ;;  %v1166_v43 = vmul.f32 %v2098_v6, %v1161_v53  ;;  %v1170_v49 = vmul.f32 %v1533_v35, %v1163_v48 }
 0x221   : > { %v1096_v63 = vrot.slane %v928_v59, %v1800_v58  ;;  %v1168_v7 = vmul.f32 %v1535_v1, %v1162_v23  ;;  %vm1097_vm0 = vcmp.ge.f32.partialorder %v1084_v51, %v1962_v45  ;;  %vm1098_vm8 = vcmp.ge.f32.partialorder %v1088_v9, %v2048_v12 }
 0x222   : > { %v1172_v28 = vmul.f32 %v1537_v22, %v1164_v54  ;;  %vm1101_vm9 = vcmp.lt.f32.partialorder %v1084_v51, %v1962_v45  ;;  %vm1102_vm10 = vcmp.lt.f32.partialorder %v1088_v9, %v2048_v12  ;;  %vm1103_vm11 = vcmp.lt.f32.partialorder %v1092_v18, %v1988_v26 }
 0x223   : > { %vm1104_vm12 = vcmp.lt.f32.partialorder %v1096_v63, %v2082_v19  ;;  %v2309_v21 = vmov 0   ;;  %v1173_v50 = vsub.f32 %v1084_v51, %v1962_v45  ;;  %v1174_v44 = vsub.f32 %v1088_v9, %v2048_v12 }
 0x224   : > { %v1105_v47 = vsel %vm1101_vm9, 1, %v2309_v21  ;;  %v1106_v58 = vsel %vm1102_vm10, 1, %v2309_v21  ;;  %v1107_v6 = vsel %vm1103_vm11, 1, %v2309_v21  ;;  %v1108_v35 = vsel %vm1104_vm12, 1, %v2309_v21 }
 0x225   : > { %v1109_v24 = vrot.slane %v1105_v47, 1  ;;  %v1110_v31 = vrot.slane %v1106_v58, 1  ;;  %v1111_v60 = vrot.slane %v1107_v6, 1  ;;  %v1112_v2 = vrot.slane %v1108_v35, 1 }
 0x226   : > { %v1175_v25 = vsub.f32 %v1092_v18, %v1988_v26  ;;  %v1176_v55 = vsub.f32 %v1096_v63, %v2082_v19  ;;  %v1181_v62 = vrot.slane %v1173_v50, 7  ;;  %v1182_v13 = vrot.slane %v1174_v44, 7 }
 0x227   : > { %vm1113_vm14 = vcmp.ne.s32.totalorder %v1109_v24, 0  ;;  %vm1114_vm15 = vcmp.ne.s32.totalorder %v1110_v31, 0  ;;  %vm1115_vm1 = vcmp.ne.s32.totalorder %v1111_v60, 0  ;;  %vm1116_vm2 = vcmp.ne.s32.totalorder %v1112_v2, 0 }
 0x228   : > { %vm1117_vm3 = vmand %vm1097_vm0, %vm1113_vm14  ;;  %vm1099_vm4 = vcmp.ge.f32.partialorder %v1092_v18, %v1988_v26  ;;  %v2310_v15 = vmov 0.0   ;;  %v1183_v3 = vrot.slane %v1175_v25, 7  ;;  %v1184_v33 = vrot.slane %v1176_v55, 7 }
 0x229   : > { %vm1118_vm5 = vmand %vm1098_vm8, %vm1114_vm15  ;;  %v1422_v11 = vsel %vm1117_vm3, 1.0, %v2310_v15  ;;  %vm1100_vm6 = vcmp.ge.f32.partialorder %v1096_v63, %v2082_v19  ;;  %v1189_v41 = vmul.f32 %v1181_v62, %v1166_v43  ;;  %v1190_v38 = vmul.f32 %v1182_v13, %v1168_v7 }
 0x22a   : > { %vm1119_vm7 = vmand %vm1099_vm4, %vm1115_vm1  ;;  %v1423_v37 = vsel %vm1118_vm5, 1.0, %v2310_v15  ;;  %v1191_v17 = vmul.f32 %v1183_v3, %v1170_v49  ;;  %v1192_v4 = vmul.f32 %v1184_v33, %v1172_v28  ;;  %v1201_v26 = vrot.slane %v1422_v11, 7 }
 0x22b   : > { %vm1120_vm9 = vmand %vm1100_vm6, %vm1116_vm2  ;;  %v1424_v45 = vsel %vm1119_vm7, 1.0, %v2310_v15  ;;  %v1193_v57 = vadd.f32 %v1189_v41, %v1153_v20  ;;  %v1194_v16 = vadd.f32 %v1190_v38, %v1154_v42  ;;  %v1202_v30 = vrot.slane %v1423_v37, 7 }
 0x22c   : > { %v1425_v12 = vsel %vm1120_vm9, 1.0, %v2310_v15  ;;  %v1195_v19 = vadd.f32 %v1191_v17, %v1155_v39  ;;  %v1196_v32 = vadd.f32 %v1192_v4, %v1156_v5  ;;  %v1203_v46 = vrot.slane %v1424_v45, 7 }
 0x22d   : > { %v1204_v27 = vrot.slane %v1425_v12, 7  ;;  %v1209_v0 = vmul.f32 %v1201_v26, %v1193_v57  ;;  %v1210_v1 = vmul.f32 %v1202_v30, %v1194_v16  ;;  %v1618_v23 = vmov 1966171168  }
 0x22e   : > { %v1211_v14 = vmul.f32 %v1203_v46, %v1195_v19  ;;  %v1260_v54 = vunpack.c.l.s4 %v1618_v23  ;;  %v2311_v11 = vlaneseq }
 0x22f   : > { %v1212_v29 = vmul.f32 %v1204_v27, %v1196_v32  ;;  %v1217_v61 = vrot.slane %v1209_v0, 1  ;;  %v1218_v40 = vrot.slane %v1210_v1, 1 }
 0x230   : > { %v1219_v34 = vrot.slane %v1211_v14, 1  ;;  %v1261_v28 = vunpack.c.0.s8 %v1260_v54 }
 0x231   : > { %v1220_v53 = vrot.slane %v1212_v29, 1  ;;  %v1225_v36 = vsel %vm996_vm13, %v1217_v61, 0.0  ;;  %v1232_v20 = vsel %vm996_vm13, %v1218_v40, 0.0 }
 0x232   : > { %v1226_v42 = vrot.slane %v1225_v36, 4  ;;  %v1233_v8 = vrot.slane %v1232_v20, 4  ;;  %v1239_v39 = vsel %vm996_vm13, %v1219_v34, 0.0  ;;  %v1264_v2 = vsub.s32 %v1261_v28, %v1794_v52 }
 0x233   : > { %v1246_v56 = vsel %vm996_vm13, %v1220_v53, 0.0  ;;  %v1240_v5 = vrot.slane %v1239_v39, 4  ;;  %vm1284_vm13 = vcmp.lt.s32.totalorder %v2311_v11, 512 }
 0x234   : > { %v1247_v48 = vrot.slane %v1246_v56, 4  ;;  %v1227_v10 = vadd.f32 %v1226_v42, %v1225_v36  ;;  %v1234_v59 = vadd.f32 %v1233_v8, %v1232_v20 }
 0x235   : > { %v1241_v51 = vadd.f32 %v1240_v5, %v1239_v39 }
 0x236   : > { %v1248_v9 = vadd.f32 %v1247_v48, %v1246_v56  ;;  %v1228_v22 = vrot.slane %v1227_v10, 2  ;;  %v1235_v18 = vrot.slane %v1234_v59, 2 }
 0x237   : > { %v1242_v63 = vrot.slane %v1241_v51, 2 }
 0x238   : > { %v1249_v43 = vrot.slane %v1248_v9, 2  ;;  %v1229_v49 = vadd.f32 %v1228_v22, %v1227_v10  ;;  %v1236_v7 = vadd.f32 %v1235_v18, %v1234_v59 }
 0x239   : > { %v1243_v21 = vadd.f32 %v1242_v63, %v1241_v51 }
 0x23a   : > { %v1250_v47 = vadd.f32 %v1249_v43, %v1248_v9  ;;  %v1230_v58 = vrot.slane %v1229_v49, 1  ;;  %v1237_v6 = vrot.slane %v1236_v7, 1 }
 0x23b   : > { %v1244_v35 = vrot.slane %v1243_v21, 1 }
 0x23c   : > { %v1251_v24 = vrot.slane %v1250_v47, 1  ;;  %v1231_v31 = vadd.f32 %v1230_v58, %v1229_v49  ;;  %v1238_v60 = vadd.f32 %v1237_v6, %v1236_v7 }
 0x23d   : > { %v1245_v50 = vadd.f32 %v1244_v35, %v1243_v21 }
 0x23e   : > { %v1252_v44 = vadd.f32 %v1251_v24, %v1250_v47  ;;  %v1257_v25 = vcombine.low %v1231_v31, %v1238_v60 }
 0x240   : > { %v1258_v55 = vcombine.low %v1245_v50, %v1252_v44  ;;  %v1265_v62 = vrot.slane %v1257_v25, %v1264_v2 }
 0x242   : > { %v1272_v13 = vrot.slane %v1258_v55, %v1264_v2 }
 0x244   : > { %v1273_v15 = vcombine.low %v1265_v62, %v1272_v13 }
 0x246   : > { %v1280_v3 = vrot.slane %v1273_v15, %v1264_v2 }
 0x248   : > { %1286 = vst.msk [vmem:[%s257_s27] sm:$0xf] %vm1284_vm13, %v1280_v3 }
 0x249   : > { %1551 = shalt.err (!%p1548_p5)
}
 0x24a   : > { %s1552_s14 = scalar_lea.hbm %s1302_s9, 64  ;;  %s1556_s17 = scalar_lea.hbm %s2272_s5, 128 }
 0x24b   : > { %p1553_p6 = scmp.ne.s32.totalorder %s1302_s9, %s1552_s14  ;;  %p1557_p10 = scmp.lt.s32.totalorder %s1302_s9, %s2272_s5 }
 0x24c   : > { %p1558_p11 = scmp.lt.s32.totalorder %s1556_s17, %s1552_s14 }
 0x24d   : > { %p1554_p7 = pnand %p1553_p6, %p1690_p4 }
 0x24e   : > { %p1559_p12 = por %p1558_p11, %p1557_p10 }
 0x24f   : > { %p1555_p9 = pneg %p1554_p7 }
 0x251   : > { %p1560_p13 = pnand %p1559_p12, %p1555_p9 }
 0x253   : > { %1563 = shalt.err (!%p1560_p13)
}
 0x254   : > { %1434 = dma.vmem_to_hbm [thread:$0]  (%p1690_p4), %s1305_s29, 64, %s1302_s9, %s1288_s10  }
 0x255 PF: > { %p1440_p0 = scmp.ge.s32.totalorder %s1614_s23, 2  ;;  %s1316_s27 = sand.u32 1, %s1594_s18  }
 0x256   : > { %s1317_s7 = scalar_lea.sflag [#allocation3], %s1316_s27 }
 0x257   : > { %p1437_p1 = pnand %p1440_p0, %p1697_p8 }
 0x259   : > { %p1438_p2 = pneg %p1437_p1 }
 0x25b   : > { %1589 = dma.done.wait (%p1438_p2), %s1317_s7, 64  }
 0x25c   : > { %1591 = vsyncadd (%p1438_p2), %s1317_s7, 4294967232  ;;  %s18_s23 = sadd.s32 1, %s1614_s23   ;;  %s2312_s18 = smov %s1598_s19 }
 0x25d   : > { %p15_p3 = scmp.ge.s32.totalorder %s18_s23, 4   ;;  %s2313_s19 = smov %s1602_s20 }
 0x25e   : > { %s2314_s20 = smov %s1703_s6  ;;  %s2315_s21 = smov %s1610_s22 }
 0x25f   : > { %s2316_s22 = smov %s2318_s26  ;;  %17 = sbr.rel (!%p15_p3) target bundleno = 4 (0x4), region = 78 }
 0x264   :  { %1322 = vsyncpa [#allocation3], 1 }
 0x265   :  { %1324 = vsyncpa [#allocation3 + $0x1], 1 }

</bundles_post_ra>
